<compile_context>
chip_gen: v7x
topology: tpu7x:2x2x1
jax: 0.10.0
libtpu: 0.0.40
codegen_flags: <defaults>
</compile_context>

<pallas_src>
import functools

import jax
import jax.numpy as jnp
from jax.experimental import pallas as pl
from jax.experimental.pallas import tpu as pltpu

_NEG_BIG = -1.0e30  # softmax mask value for padded class columns (via ||c||^2)


def _round_up(x, m):
    return -(-x // m) * m


def _arpl_kernel(radius_ref, z_ref, lab_ref, ct_ref, c2_ref, ce_out_ref, hinge_out_ref,
                 *, batch, tile_b, inv_dtemp, inv_temp, inv_d):
    i = pl.program_id(0)

    Zt = z_ref[...]                     # (TB, Dp) native dtype -> MXU input
    Ct = ct_ref[...]                    # (Dp, Cp) native dtype, resident across the grid
    lab = lab_ref[...]                  # (TB, 1)  int32
    c2 = c2_ref[...]                    # (1, Cp)  f32 raw ||c||^2 (padded cols = -1e30)

    # Single MXU matmul: Z @ centers^T with the resident RHS presented K-major (Dp, Cp).
    dot = jax.lax.dot_general(
        Zt, Ct, dimension_numbers=(((1,), (0,)), ((), ())),
        preferred_element_type=jnp.float32)                               # (TB, Cp)

    Zf = Zt.astype(jnp.float32)
    f2 = jnp.sum(Zf * Zf, axis=1, keepdims=True)                          # (TB, 1)

    # Folded logits: one multiply + broadcast adds over the (TB, Cp) tensor.
    #   logits = f2/(D*temp) + c2/(D*temp) - dot*(2/(D*temp) + 1/temp)
    coeff = jnp.float32(2.0 * inv_dtemp + inv_temp)
    c2s = c2 * jnp.float32(inv_dtemp)                                     # (1, Cp) tiny
    f2s = f2 * jnp.float32(inv_dtemp)                                     # (TB, 1) tiny
    logits = f2s + c2s - dot * coeff                                      # (TB, Cp)

    # Boolean one-hot built in-kernel from int labels (no f32 one-hot, no HBM traffic).
    onehot = jax.lax.broadcasted_iota(jnp.int32, dot.shape, 1) == lab     # (TB, Cp) bool

    # Temperature-scaled softmax cross-entropy per row (all f32).
    m = jnp.max(logits, axis=1, keepdims=True)
    lse = m + jnp.log(jnp.sum(jnp.exp(logits - m), axis=1, keepdims=True))

    zero = jnp.float32(0.0)
    picked_dot = jnp.sum(jnp.where(onehot, dot, zero), axis=1, keepdims=True)   # (TB, 1)
    picked_c2 = jnp.sum(jnp.where(onehot, c2, zero), axis=1, keepdims=True)     # (TB, 1)
    picked_logit = f2s + picked_c2 * jnp.float32(inv_dtemp) - picked_dot * coeff
    ce_rows = lse - picked_logit                                                # (TB, 1)

    # dis_known = mean((Z - centers[label])^2) = (||z||^2 - 2*z.c_lab + ||c_lab||^2)/D
    # (algebraic form; no onehot@centers matmul, no (TB, D) diff temporary).
    dis_known = (f2 - 2.0 * picked_dot + picked_c2) * jnp.float32(inv_d)        # (TB, 1)

    # MarginRankingLoss(radius, dis_known, target=1, margin=1)
    #   = max(0, dis_known - radius + 1) ; (1 - radius) folded into one scalar.
    hinge_bias = 1.0 - radius_ref[0]
    hinge_rows = jnp.maximum(dis_known + hinge_bias, 0.0)                       # (TB, 1)

    # Mask padded batch rows so they contribute 0 to both partial sums.
    row = jax.lax.broadcasted_iota(jnp.int32, (tile_b, 1), 0) + i * tile_b
    valid = row < batch
    ce_part = jnp.sum(jnp.where(valid, ce_rows, zero))
    hinge_part = jnp.sum(jnp.where(valid, hinge_rows, zero))

    # Lane-dense per-tile partial outputs (unmasked vst); final tiny mean in the wrapper.
    ce_out_ref[...] = jnp.full((1, 8, 128), ce_part, dtype=jnp.float32)
    hinge_out_ref[...] = jnp.full((1, 8, 128), hinge_part, dtype=jnp.float32)


def _vmem_policy():
    """Generation-dependent (VMEM budget for tiling, vmem_limit_bytes, physical VMEM)."""
    try:
        cap = int(pltpu.get_tpu_info().vmem_capacity_bytes)
    except Exception:
        cap = 64 * 1024 * 1024          # conservative default (v7x-class per-core VMEM)
    if cap >= 128 * 1024 * 1024:        # v5e / v6e: 128 MiB VMEM -> use it
        return 64 * 1024 * 1024, 96 * 1024 * 1024, cap
    return 24 * 1024 * 1024, 32 * 1024 * 1024, cap   # v7x-class: 64 MiB physical


def _choose_tile_b(batch, d_pad, c_pad, itemsize, sublane, budget, max_tile_b,
                   force_two_tiles):
    """Pick a batch tile that fits the VMEM budget with honest byte accounting."""
    # Fixed residents: centers^T (Dp, Cp) + ||c||^2 (1, Cp) (count 2 buffers to cover the
    # double-buffered fallback path) + two (1, 8, 128) f32 outputs (double-buffered).
    fixed = 2 * (d_pad * c_pad * itemsize + c_pad * 4) + 2 * 2 * 8 * 128 * 4
    # Per batch row: streamed Z + labels (double-buffered, native dtype), ~4 f32 (TB, Cp)
    # temporaries (dot / logits / exp / where-masked), Zf (TB, Dp) f32, small (TB, 1) vecs.
    per_row = 2 * (d_pad * itemsize + 4) + 4 * c_pad * 4 + d_pad * 4 + 64
    avail = max(budget - fixed, 0)
    tb = max(sublane, avail // per_row)
    tb = min(tb, 2048, _round_up(batch, sublane))
    if max_tile_b is not None:
        tb = min(tb, max(sublane, max_tile_b))     # never below the dtype sublane packing
    if force_two_tiles and batch > sublane:
        # v7x-class: guarantee >= 2 grid tiles so both TensorCores get work.
        half = _round_up(-(-batch // 2), sublane)
        if half < batch:
            tb = min(tb, half)
    for align in (256, 128, sublane):              # MXU-friendly, then sublane packing
        if tb >= align:
            tb = (tb // align) * align
            break
    else:
        tb = sublane
    return int(tb)


def arpl_loss(Z, labels, centers, radius, *, weight_pl=0.1, temp=1.0, max_tile_b=None):
    """Pallas implementation of ARPLLoss.forward.

    Z:       (B, D) features (f32 or bf16; streamed in native dtype)
    labels:  (B,)   int class labels
    centers: (C, D) centers parameter
    radius:  (1,)   radius parameter
    """
    B, D = Z.shape
    C = centers.shape[0]
    if centers.dtype != Z.dtype:
        centers = centers.astype(Z.dtype)

    itemsize = jnp.dtype(Z.dtype).itemsize
    sublane = 8 * (4 // itemsize)                 # 8 for f32, 16 for bf16, 32 for int8
    Dp = _round_up(D, 128)                        # lane-dense / MXU-friendly contraction dim
    Cp = _round_up(C, 128)                        # lane-dense class dim

    budget, vmem_limit, vmem_cap = _vmem_policy()
    force_two_tiles = vmem_cap < 128 * 1024 * 1024   # v7x-class proxy (2 TCs/chip)
    # TODO(synk): switch the 2-TC detection to an explicit core-count query once TpuInfo
    # exposes it; the VMEM-capacity proxy is conservative but correct either way.

    tb = _choose_tile_b(B, Dp, Cp, itemsize, sublane, budget, max_tile_b, force_two_tiles)
    num_tiles = -(-B // tb)
    b_pad = num_tiles * tb

    # Pad batch / feature dims (zeros) only when needed; 1/D uses the ORIGINAL D.
    z_p = Z
    if b_pad != B or Dp != D:
        z_p = jnp.pad(Z, ((0, b_pad - B), (0, Dp - D)))
    lab_p = labels.astype(jnp.int32)
    if b_pad != B:
        lab_p = jnp.pad(lab_p, (0, b_pad - B))
    lab2d = lab_p.reshape(b_pad, 1)

    # Resident centers pre-transposed to K-major (Dp, Cp); padded rows/cols are zeros.
    ct = centers.T
    if ct.shape != (Dp, Cp):
        ct = jnp.pad(ct, ((0, Dp - D), (0, Cp - C)))

    # Loop-invariant ||c||^2 (1, Cp); padded class columns get a huge negative value so
    # their logits never contribute to the softmax (and are never selected by labels).
    c2 = jnp.sum(centers.astype(jnp.float32) ** 2, axis=1)[None, :]
    if Cp != C:
        c2 = jnp.pad(c2, ((0, 0), (0, Cp - C)), constant_values=_NEG_BIG)

    radius_f = radius.astype(jnp.float32).reshape(1)

    kernel = functools.partial(
        _arpl_kernel, batch=B, tile_b=tb,
        inv_dtemp=1.0 / (D * temp), inv_temp=1.0 / temp, inv_d=1.0 / D)

    def _build(single_buffer_resident):
        if single_buffer_resident:
            # Resident operands have a constant block index; single-buffer them so the
            # (Dp, Cp) centers don't eat 2x their footprint out of VMEM (key on v7x).
            ct_spec = pl.BlockSpec((Dp, Cp), lambda i: (0, 0), pipeline_mode=pl.Buffered(1))
            c2_spec = pl.BlockSpec((1, Cp), lambda i: (0, 0), pipeline_mode=pl.Buffered(1))
        else:
            ct_spec = pl.BlockSpec((Dp, Cp), lambda i: (0, 0))
            c2_spec = pl.BlockSpec((1, Cp), lambda i: (0, 0))
        return pl.pallas_call(
            kernel,
            out_shape=(jax.ShapeDtypeStruct((num_tiles, 8, 128), jnp.float32),
                       jax.ShapeDtypeStruct((num_tiles, 8, 128), jnp.float32)),
            grid_spec=pltpu.PrefetchScalarGridSpec(
                num_scalar_prefetch=0,
                grid=(num_tiles,),
                in_specs=[
                    pl.BlockSpec(memory_space=pltpu.MemorySpace.SMEM),   # radius scalar
                    # TODO(synk): if a v5e profile shows exposed Z DMA, bump this spec to
                    # pipeline_mode=pl.Buffered(3).
                    pl.BlockSpec((tb, Dp), lambda i: (i, 0)),            # Z (streamed)
                    pl.BlockSpec((tb, 1), lambda i: (i, 0)),             # labels (streamed)
                    ct_spec,                                             # centers^T resident
                    c2_spec,                                             # ||c||^2 resident
                ],
                out_specs=[
                    pl.BlockSpec((1, 8, 128), lambda i: (i, 0, 0)),      # ce partial sums
                    pl.BlockSpec((1, 8, 128), lambda i: (i, 0, 0)),      # hinge partial sums
                ],
            ),
            compiler_params=pltpu.CompilerParams(
                dimension_semantics=("parallel",),        # independent per-tile outputs
                vmem_limit_bytes=vmem_limit,              # generation-dependent
            ),
        )

    try:
        ce_parts, hinge_parts = _build(True)(radius_f, z_p, lab2d, ct, c2)
    except Exception:
        # Fallback: this jax/TPU combo rejects single-buffering requests -> default
        # double buffering (the tile chooser already accounted for 2 resident copies).
        ce_parts, hinge_parts = _build(False)(radius_f, z_p, lab2d, ct, c2)

    ce = jnp.sum(ce_parts[:, 0, 0]) / B
    loss_r = jnp.sum(hinge_parts[:, 0, 0]) / B
    return ce + weight_pl * loss_r


def arpl_loss_ref(Z, labels, centers, radius, *, weight_pl=0.1, temp=1.0):
    """Pure-JAX reference mirroring the PyTorch module."""
    dot = Z @ centers.T
    f2 = jnp.sum(Z ** 2, axis=1, keepdims=True)
    c2 = jnp.sum(centers ** 2, axis=1, keepdims=True)
    dist_l2 = (f2 - 2.0 * dot + c2.T) / Z.shape[1]
    logits = (dist_l2 - dot) / temp
    lse = jax.nn.logsumexp(logits, axis=1)
    picked = jnp.take_along_axis(logits, labels[:, None], axis=1)[:, 0]
    ce = jnp.mean(lse - picked)
    cb = centers[labels, :]
    dis_known = jnp.mean((Z - cb) ** 2, axis=1)
    loss_r = jnp.mean(jnp.maximum(dis_known - radius[0] + 1.0, 0.0))
    return ce + weight_pl * loss_r


if __name__ == "__main__":
    key = jax.random.PRNGKey(0)
    k_z, k_c, k_l = jax.random.split(key, 3)

    B, D, C = 20, 32, 16          # batch, feat_dim, num_classes (small test shapes)

    Z = jax.random.normal(k_z, (B, D), dtype=jnp.float32)
    labels = jax.random.randint(k_l, (B,), 0, C, dtype=jnp.int32)

    # Deterministic parameter init mirroring the module's __init__:
    centers = 0.1 * jax.random.normal(k_c, (C, D), dtype=jnp.float32)
    radius = jnp.zeros((1,), dtype=jnp.float32)

    ref = arpl_loss_ref(Z, labels, centers, radius, weight_pl=0.1, temp=1.0)

    # f32 path, forced small tile: exercises the batch grid + padded-row/class masking
    # (B=20 -> 3 tiles of 8 rows; D 32->128 and C 16->128 padded).
    loss = arpl_loss(Z, labels, centers, radius, weight_pl=0.1, temp=1.0, max_tile_b=8)
    jax.block_until_ready(loss)
    assert jnp.allclose(loss, ref, rtol=1e-4, atol=1e-5), (loss, ref)

    # Auto tile-size path (exercises the VMEM-budget chooser / generation policy).
    loss_auto = arpl_loss(Z, labels, centers, radius, weight_pl=0.1, temp=1.0)
    jax.block_until_ready(loss_auto)
    assert jnp.allclose(loss_auto, ref, rtol=1e-4, atol=1e-5), (loss_auto, ref)

    # bf16 feature path: native dtype straight to the MXU (f32 accumulation); tile kept
    # at the bf16 sublane packing (16 rows).
    Zb = Z.astype(jnp.bfloat16)
    Cb = centers.astype(jnp.bfloat16)
    loss_bf = arpl_loss(Zb, labels, Cb, radius, weight_pl=0.1, temp=1.0, max_tile_b=16)
    jax.block_until_ready(loss_bf)
    ref_bf = arpl_loss_ref(Zb.astype(jnp.float32), labels, Cb.astype(jnp.float32),
                           radius, weight_pl=0.1, temp=1.0)
    assert jnp.allclose(loss_bf, ref_bf, rtol=2e-2, atol=2e-2), (loss_bf, ref_bf)

    print("KERNEL_OK")
</pallas_src>

<mosaic_0001>
module attributes {stable_mosaic.version = 11 : i64} {
  func.func @_arpl_kernel(%arg0: i32, %arg1: memref<1xf32, #tpu.memory_space<smem>>, %arg2: memref<8x128xf32, #tpu.memory_space<vmem>>, %arg3: memref<8x1xi32, #tpu.memory_space<vmem>>, %arg4: memref<128x128xf32, #tpu.memory_space<vmem>>, %arg5: memref<1x128xf32, #tpu.memory_space<vmem>>, %arg6: memref<1x8x128xf32, #tpu.memory_space<vmem>>, %arg7: memref<1x8x128xf32, #tpu.memory_space<vmem>>) attributes {dimension_semantics = [#tpu.dimension_semantics<parallel>], iteration_bounds = array<i64: 3>, scalar_prefetch = 0 : i64, scratch_operands = 0 : i64, tpu.core_type = #tpu.core_type<tc>, window_params = [{transform_indices = @transform_0, window_bounds = array<i64: 1>}, {transform_indices = @transform_1, window_bounds = array<i64: 8, 128>}, {transform_indices = @transform_2, window_bounds = array<i64: 8, 1>}, {pipeline_mode = #tpu.pipeline_mode<synchronous>, transform_indices = @transform_3, window_bounds = array<i64: 128, 128>}, {pipeline_mode = #tpu.pipeline_mode<synchronous>, transform_indices = @transform_4, window_bounds = array<i64: 1, 128>}, {transform_indices = @transform_5, window_bounds = array<i64: 1, 8, 128>}, {transform_indices = @transform_6, window_bounds = array<i64: 1, 8, 128>}]} {
    %c0 = arith.constant 0 : index
    %c0_0 = arith.constant 0 : index
    %0 = vector.load %arg2[%c0, %c0_0] : memref<8x128xf32, #tpu.memory_space<vmem>>, vector<8x128xf32>
    %c0_1 = arith.constant 0 : index
    %c0_2 = arith.constant 0 : index
    %1 = vector.load %arg4[%c0_1, %c0_2] : memref<128x128xf32, #tpu.memory_space<vmem>>, vector<128x128xf32>
    %c0_3 = arith.constant 0 : index
    %c0_4 = arith.constant 0 : index
    %2 = vector.load %arg3[%c0_3, %c0_4] : memref<8x1xi32, #tpu.memory_space<vmem>>, vector<8x1xi32>
    %c0_5 = arith.constant 0 : index
    %c0_6 = arith.constant 0 : index
    %3 = vector.load %arg5[%c0_5, %c0_6] : memref<1x128xf32, #tpu.memory_space<vmem>>, vector<1x128xf32>
    %cst = arith.constant dense<0.000000e+00> : vector<8x128xf32>
    %4 = tpu.matmul %0, %1, %cst {dimension_numbers = #tpu.dot_dimension_numbers<[1], [0], [0], [1], [0, 0, 1, 1], [], []>} : vector<8x128xf32>, vector<128x128xf32>, vector<8x128xf32> -> vector<8x128xf32>
    %5 = arith.mulf %0, %0 : vector<8x128xf32>
    %cst_7 = arith.constant dense<0.000000e+00> : vector<8xf32>
    %6 = vector.multi_reduction <add>, %5, %cst_7 [1] : vector<8x128xf32> to vector<8xf32>
    %7 = vector.shape_cast %6 : vector<8xf32> to vector<8x1xf32>
    %cst_8 = arith.constant 3.125000e-02 : f32
    %8 = vector.broadcast %cst_8 : f32 to vector<1x128xf32>
    %9 = arith.mulf %3, %8 : vector<1x128xf32>
    %cst_9 = arith.constant 3.125000e-02 : f32
    %10 = vector.broadcast %cst_9 : f32 to vector<8x1xf32>
    %11 = arith.mulf %7, %10 : vector<8x1xf32>
    %12 = vector.broadcast %11 : vector<8x1xf32> to vector<8x128xf32>
    %13 = vector.broadcast %9 : vector<1x128xf32> to vector<8x128xf32>
    %14 = arith.addf %12, %13 : vector<8x128xf32>
    %cst_10 = arith.constant 1.062500e+00 : f32
    %15 = vector.broadcast %cst_10 : f32 to vector<8x128xf32>
    %16 = arith.mulf %4, %15 : vector<8x128xf32>
    %17 = arith.subf %14, %16 : vector<8x128xf32>
    %18 = tpu.iota {dimensions = array<i32: 1>} : vector<8x128xi32>
    %19 = vector.broadcast %2 : vector<8x1xi32> to vector<8x128xi32>
    %20 = arith.cmpi eq, %18, %19 : vector<8x128xi32>
    %cst_11 = arith.constant dense<0xFF800000> : vector<8xf32>
    %21 = vector.multi_reduction <maximumf>, %17, %cst_11 [1] : vector<8x128xf32> to vector<8xf32>
    %22 = vector.shape_cast %21 : vector<8xf32> to vector<8x1xf32>
    %23 = vector.broadcast %22 : vector<8x1xf32> to vector<8x128xf32>
    %24 = arith.subf %17, %23 : vector<8x128xf32>
    %25 = math.exp %24 : vector<8x128xf32>
    %cst_12 = arith.constant dense<0.000000e+00> : vector<8xf32>
    %26 = vector.multi_reduction <add>, %25, %cst_12 [1] : vector<8x128xf32> to vector<8xf32>
    %27 = vector.shape_cast %26 : vector<8xf32> to vector<8x1xf32>
    %28 = math.log %27 : vector<8x1xf32>
    %29 = arith.addf %22, %28 : vector<8x1xf32>
    %cst_13 = arith.constant 0.000000e+00 : f32
    %30 = vector.broadcast %cst_13 : f32 to vector<8x128xf32>
    %31 = arith.select %20, %4, %30 : vector<8x128xi1>, vector<8x128xf32>
    %cst_14 = arith.constant dense<0.000000e+00> : vector<8xf32>
    %32 = vector.multi_reduction <add>, %31, %cst_14 [1] : vector<8x128xf32> to vector<8xf32>
    %33 = vector.shape_cast %32 : vector<8xf32> to vector<8x1xf32>
    %cst_15 = arith.constant 0.000000e+00 : f32
    %34 = vector.shape_cast %3 : vector<1x128xf32> to vector<1x128xf32>
    %35 = vector.broadcast %34 : vector<1x128xf32> to vector<8x128xf32>
    %36 = vector.broadcast %cst_15 : f32 to vector<8x128xf32>
    %37 = arith.select %20, %35, %36 : vector<8x128xi1>, vector<8x128xf32>
    %cst_16 = arith.constant dense<0.000000e+00> : vector<8xf32>
    %38 = vector.multi_reduction <add>, %37, %cst_16 [1] : vector<8x128xf32> to vector<8xf32>
    %39 = vector.shape_cast %38 : vector<8xf32> to vector<8x1xf32>
    %cst_17 = arith.constant 3.125000e-02 : f32
    %40 = vector.broadcast %cst_17 : f32 to vector<8x1xf32>
    %41 = arith.mulf %39, %40 : vector<8x1xf32>
    %42 = arith.addf %11, %41 : vector<8x1xf32>
    %cst_18 = arith.constant 1.062500e+00 : f32
    %43 = vector.broadcast %cst_18 : f32 to vector<8x1xf32>
    %44 = arith.mulf %33, %43 : vector<8x1xf32>
    %45 = arith.subf %42, %44 : vector<8x1xf32>
    %46 = arith.subf %29, %45 : vector<8x1xf32>
    %cst_19 = arith.constant 2.000000e+00 : f32
    %47 = vector.broadcast %cst_19 : f32 to vector<8x1xf32>
    %48 = arith.mulf %47, %33 : vector<8x1xf32>
    %49 = arith.subf %7, %48 : vector<8x1xf32>
    %50 = arith.addf %49, %39 : vector<8x1xf32>
    %cst_20 = arith.constant 3.125000e-02 : f32
    %51 = vector.broadcast %cst_20 : f32 to vector<8x1xf32>
    %52 = arith.mulf %50, %51 : vector<8x1xf32>
    %c0_21 = arith.constant 0 : index
    %53 = memref.load %arg1[%c0_21] : memref<1xf32, #tpu.memory_space<smem>>
    %cst_22 = arith.constant 1.000000e+00 : f32
    %54 = arith.subf %cst_22, %53 : f32
    %55 = vector.broadcast %54 : f32 to vector<8x1xf32>
    %56 = arith.addf %52, %55 : vector<8x1xf32>
    %cst_23 = arith.constant 0.000000e+00 : f32
    %57 = vector.broadcast %cst_23 : f32 to vector<8x1xf32>
    %58 = arith.maximumf %56, %57 : vector<8x1xf32>
    %59 = tpu.iota {dimensions = array<i32: 0>} : vector<8x1xi32>
    %c8_i32 = arith.constant 8 : i32
    %60 = arith.muli %arg0, %c8_i32 : i32
    %61 = vector.broadcast %60 : i32 to vector<8x1xi32>
    %62 = arith.addi %59, %61 : vector<8x1xi32>
    %c20_i32 = arith.constant 20 : i32
    %63 = vector.broadcast %c20_i32 : i32 to vector<8x1xi32>
    %64 = arith.cmpi slt, %62, %63 : vector<8x1xi32>
    %cst_24 = arith.constant 0.000000e+00 : f32
    %65 = vector.broadcast %cst_24 : f32 to vector<8x1xf32>
    %66 = arith.select %64, %46, %65 : vector<8x1xi1>, vector<8x1xf32>
    %67 = vector.shape_cast %66 : vector<8x1xf32> to vector<1x8x1xf32>
    %cst_25 = arith.constant dense<0.000000e+00> : vector<1xf32>
    %68 = vector.multi_reduction <add>, %67, %cst_25 [1, 2] : vector<1x8x1xf32> to vector<1xf32>
    %69 = vector.shape_cast %68 : vector<1xf32> to vector<1x1x1xf32>
    %70 = vector.extract %69[0, 0, 0] : f32 from vector<1x1x1xf32>
    %cst_26 = arith.constant 0.000000e+00 : f32
    %71 = vector.broadcast %cst_26 : f32 to vector<8x1xf32>
    %72 = arith.select %64, %58, %71 : vector<8x1xi1>, vector<8x1xf32>
    %73 = vector.shape_cast %72 : vector<8x1xf32> to vector<1x8x1xf32>
    %cst_27 = arith.constant dense<0.000000e+00> : vector<1xf32>
    %74 = vector.multi_reduction <add>, %73, %cst_27 [1, 2] : vector<1x8x1xf32> to vector<1xf32>
    %75 = vector.shape_cast %74 : vector<1xf32> to vector<1x1x1xf32>
    %76 = vector.extract %75[0, 0, 0] : f32 from vector<1x1x1xf32>
    %77 = vector.broadcast %70 : f32 to vector<1x8x128xf32>
    %c0_28 = arith.constant 0 : index
    %c0_29 = arith.constant 0 : index
    %c0_30 = arith.constant 0 : index
    %78 = vector.load %arg6[%c0_28, %c0_29, %c0_30] : memref<1x8x128xf32, #tpu.memory_space<vmem>>, vector<1x8x128xf32>
    tpu.vector_store %arg6[%c0_28, %c0_29, %c0_30], %77 {strides = array<i32>} : memref<1x8x128xf32, #tpu.memory_space<vmem>>, vector<1x8x128xf32>,
    %79 = vector.broadcast %76 : f32 to vector<1x8x128xf32>
    %c0_31 = arith.constant 0 : index
    %c0_32 = arith.constant 0 : index
    %c0_33 = arith.constant 0 : index
    %80 = vector.load %arg7[%c0_31, %c0_32, %c0_33] : memref<1x8x128xf32, #tpu.memory_space<vmem>>, vector<1x8x128xf32>
    tpu.vector_store %arg7[%c0_31, %c0_32, %c0_33], %79 {strides = array<i32>} : memref<1x8x128xf32, #tpu.memory_space<vmem>>, vector<1x8x128xf32>,
    return
  }
  func.func @transform_0(%arg0: i32) -> i32 {
    %c0_i32 = arith.constant 0 : i32
    %c0_i32_0 = arith.constant 0 : i32
    return %c0_i32 : i32
  }
  func.func @transform_1(%arg0: i32) -> (i32, i32) {
    %c0_i32 = arith.constant 0 : i32
    %c0_i32_0 = arith.constant 0 : i32
    return %arg0, %c0_i32 : i32, i32
  }
  func.func @transform_2(%arg0: i32) -> (i32, i32) {
    %c0_i32 = arith.constant 0 : i32
    %c0_i32_0 = arith.constant 0 : i32
    return %arg0, %c0_i32 : i32, i32
  }
  func.func @transform_3(%arg0: i32) -> (i32, i32) {
    %c0_i32 = arith.constant 0 : i32
    %c0_i32_0 = arith.constant 0 : i32
    %c0_i32_1 = arith.constant 0 : i32
    return %c0_i32, %c0_i32_0 : i32, i32
  }
  func.func @transform_4(%arg0: i32) -> (i32, i32) {
    %c0_i32 = arith.constant 0 : i32
    %c0_i32_0 = arith.constant 0 : i32
    %c0_i32_1 = arith.constant 0 : i32
    return %c0_i32, %c0_i32_0 : i32, i32
  }
  func.func @transform_5(%arg0: i32) -> (i32, i32, i32) {
    %c0_i32 = arith.constant 0 : i32
    %c0_i32_0 = arith.constant 0 : i32
    %c0_i32_1 = arith.constant 0 : i32
    return %arg0, %c0_i32, %c0_i32_0 : i32, i32, i32
  }
  func.func @transform_6(%arg0: i32) -> (i32, i32, i32) {
    %c0_i32 = arith.constant 0 : i32
    %c0_i32_0 = arith.constant 0 : i32
    %c0_i32_1 = arith.constant 0 : i32
    return %arg0, %c0_i32, %c0_i32_0 : i32, i32, i32
  }
}

module attributes {stable_mosaic.version = 11 : i64} {
  func.func @_arpl_kernel(%arg0: i32, %arg1: memref<1xf32, #tpu.memory_space<smem>>, %arg2: memref<8x128xf32, #tpu.memory_space<vmem>>, %arg3: memref<8x1xi32, #tpu.memory_space<vmem>>, %arg4: memref<128x128xf32, #tpu.memory_space<vmem>>, %arg5: memref<1x128xf32, #tpu.memory_space<vmem>>, %arg6: memref<1x8x128xf32, #tpu.memory_space<vmem>>, %arg7: memref<1x8x128xf32, #tpu.memory_space<vmem>>) attributes {dimension_semantics = [#tpu.dimension_semantics<parallel>], iteration_bounds = array<i64: 3>, scalar_prefetch = 0 : i64, scratch_operands = 0 : i64, tpu.core_type = #tpu.core_type<tc>, window_params = [{transform_indices = @transform_0, window_bounds = array<i64: 1>}, {transform_indices = @transform_1, window_bounds = array<i64: 8, 128>}, {transform_indices = @transform_2, window_bounds = array<i64: 8, 1>}, {pipeline_mode = #tpu.pipeline_mode<synchronous>, transform_indices = @transform_3, window_bounds = array<i64: 128, 128>}, {pipeline_mode = #tpu.pipeline_mode<synchronous>, transform_indices = @transform_4, window_bounds = array<i64: 1, 128>}, {transform_indices = @transform_5, window_bounds = array<i64: 1, 8, 128>}, {transform_indices = @transform_6, window_bounds = array<i64: 1, 8, 128>}]} {
    %c0 = arith.constant 0 : index
    %c0_0 = arith.constant 0 : index
    %0 = vector.load %arg2[%c0, %c0_0] : memref<8x128xf32, #tpu.memory_space<vmem>>, vector<8x128xf32>
    %c0_1 = arith.constant 0 : index
    %c0_2 = arith.constant 0 : index
    %1 = vector.load %arg4[%c0_1, %c0_2] : memref<128x128xf32, #tpu.memory_space<vmem>>, vector<128x128xf32>
    %c0_3 = arith.constant 0 : index
    %c0_4 = arith.constant 0 : index
    %2 = vector.load %arg3[%c0_3, %c0_4] : memref<8x1xi32, #tpu.memory_space<vmem>>, vector<8x1xi32>
    %c0_5 = arith.constant 0 : index
    %c0_6 = arith.constant 0 : index
    %3 = vector.load %arg5[%c0_5, %c0_6] : memref<1x128xf32, #tpu.memory_space<vmem>>, vector<1x128xf32>
    %cst = arith.constant dense<0.000000e+00> : vector<8x128xf32>
    %4 = tpu.matmul %0, %1, %cst {dimension_numbers = #tpu.dot_dimension_numbers<[1], [0], [0], [1], [0, 0, 1, 1], [], []>} : vector<8x128xf32>, vector<128x128xf32>, vector<8x128xf32> -> vector<8x128xf32>
    %5 = arith.mulf %0, %0 : vector<8x128xf32>
    %cst_7 = arith.constant dense<0.000000e+00> : vector<8xf32>
    %6 = vector.multi_reduction <add>, %5, %cst_7 [1] : vector<8x128xf32> to vector<8xf32>
    %7 = vector.shape_cast %6 : vector<8xf32> to vector<8x1xf32>
    %cst_8 = arith.constant 3.125000e-02 : f32
    %8 = vector.broadcast %cst_8 : f32 to vector<1x128xf32>
    %9 = arith.mulf %3, %8 : vector<1x128xf32>
    %cst_9 = arith.constant 3.125000e-02 : f32
    %10 = vector.broadcast %cst_9 : f32 to vector<8x1xf32>
    %11 = arith.mulf %7, %10 : vector<8x1xf32>
    %12 = vector.broadcast %11 : vector<8x1xf32> to vector<8x128xf32>
    %13 = vector.broadcast %9 : vector<1x128xf32> to vector<8x128xf32>
    %14 = arith.addf %12, %13 : vector<8x128xf32>
    %cst_10 = arith.constant 1.062500e+00 : f32
    %15 = vector.broadcast %cst_10 : f32 to vector<8x128xf32>
    %16 = arith.mulf %4, %15 : vector<8x128xf32>
    %17 = arith.subf %14, %16 : vector<8x128xf32>
    %18 = tpu.iota {dimensions = array<i32: 1>} : vector<8x128xi32>
    %19 = vector.broadcast %2 : vector<8x1xi32> to vector<8x128xi32>
    %20 = arith.cmpi eq, %18, %19 : vector<8x128xi32>
    %cst_11 = arith.constant dense<0xFF800000> : vector<8xf32>
    %21 = vector.multi_reduction <maximumf>, %17, %cst_11 [1] : vector<8x128xf32> to vector<8xf32>
    %22 = vector.shape_cast %21 : vector<8xf32> to vector<8x1xf32>
    %23 = vector.broadcast %22 : vector<8x1xf32> to vector<8x128xf32>
    %24 = arith.subf %17, %23 : vector<8x128xf32>
    %25 = math.exp %24 : vector<8x128xf32>
    %cst_12 = arith.constant dense<0.000000e+00> : vector<8xf32>
    %26 = vector.multi_reduction <add>, %25, %cst_12 [1] : vector<8x128xf32> to vector<8xf32>
    %27 = vector.shape_cast %26 : vector<8xf32> to vector<8x1xf32>
    %28 = math.log %27 : vector<8x1xf32>
    %29 = arith.addf %22, %28 : vector<8x1xf32>
    %cst_13 = arith.constant 0.000000e+00 : f32
    %30 = vector.broadcast %cst_13 : f32 to vector<8x128xf32>
    %31 = arith.select %20, %4, %30 : vector<8x128xi1>, vector<8x128xf32>
    %cst_14 = arith.constant dense<0.000000e+00> : vector<8xf32>
    %32 = vector.multi_reduction <add>, %31, %cst_14 [1] : vector<8x128xf32> to vector<8xf32>
    %33 = vector.shape_cast %32 : vector<8xf32> to vector<8x1xf32>
    %cst_15 = arith.constant 0.000000e+00 : f32
    %34 = vector.shape_cast %3 : vector<1x128xf32> to vector<1x128xf32>
    %35 = vector.broadcast %34 : vector<1x128xf32> to vector<8x128xf32>
    %36 = vector.broadcast %cst_15 : f32 to vector<8x128xf32>
    %37 = arith.select %20, %35, %36 : vector<8x128xi1>, vector<8x128xf32>
    %cst_16 = arith.constant dense<0.000000e+00> : vector<8xf32>
    %38 = vector.multi_reduction <add>, %37, %cst_16 [1] : vector<8x128xf32> to vector<8xf32>
    %39 = vector.shape_cast %38 : vector<8xf32> to vector<8x1xf32>
    %cst_17 = arith.constant 3.125000e-02 : f32
    %40 = vector.broadcast %cst_17 : f32 to vector<8x1xf32>
    %41 = arith.mulf %39, %40 : vector<8x1xf32>
    %42 = arith.addf %11, %41 : vector<8x1xf32>
    %cst_18 = arith.constant 1.062500e+00 : f32
    %43 = vector.broadcast %cst_18 : f32 to vector<8x1xf32>
    %44 = arith.mulf %33, %43 : vector<8x1xf32>
    %45 = arith.subf %42, %44 : vector<8x1xf32>
    %46 = arith.subf %29, %45 : vector<8x1xf32>
    %cst_19 = arith.constant 2.000000e+00 : f32
    %47 = vector.broadcast %cst_19 : f32 to vector<8x1xf32>
    %48 = arith.mulf %47, %33 : vector<8x1xf32>
    %49 = arith.subf %7, %48 : vector<8x1xf32>
    %50 = arith.addf %49, %39 : vector<8x1xf32>
    %cst_20 = arith.constant 3.125000e-02 : f32
    %51 = vector.broadcast %cst_20 : f32 to vector<8x1xf32>
    %52 = arith.mulf %50, %51 : vector<8x1xf32>
    %c0_21 = arith.constant 0 : index
    %53 = memref.load %arg1[%c0_21] : memref<1xf32, #tpu.memory_space<smem>>
    %cst_22 = arith.constant 1.000000e+00 : f32
    %54 = arith.subf %cst_22, %53 : f32
    %55 = vector.broadcast %54 : f32 to vector<8x1xf32>
    %56 = arith.addf %52, %55 : vector<8x1xf32>
    %cst_23 = arith.constant 0.000000e+00 : f32
    %57 = vector.broadcast %cst_23 : f32 to vector<8x1xf32>
    %58 = arith.maximumf %56, %57 : vector<8x1xf32>
    %59 = tpu.iota {dimensions = array<i32: 0>} : vector<8x1xi32>
    %c8_i32 = arith.constant 8 : i32
    %60 = arith.muli %arg0, %c8_i32 : i32
    %61 = vector.broadcast %60 : i32 to vector<8x1xi32>
    %62 = arith.addi %59, %61 : vector<8x1xi32>
    %c20_i32 = arith.constant 20 : i32
    %63 = vector.broadcast %c20_i32 : i32 to vector<8x1xi32>
    %64 = arith.cmpi slt, %62, %63 : vector<8x1xi32>
    %cst_24 = arith.constant 0.000000e+00 : f32
    %65 = vector.broadcast %cst_24 : f32 to vector<8x1xf32>
    %66 = arith.select %64, %46, %65 : vector<8x1xi1>, vector<8x1xf32>
    %67 = vector.shape_cast %66 : vector<8x1xf32> to vector<1x8x1xf32>
    %cst_25 = arith.constant dense<0.000000e+00> : vector<1xf32>
    %68 = vector.multi_reduction <add>, %67, %cst_25 [1, 2] : vector<1x8x1xf32> to vector<1xf32>
    %69 = vector.shape_cast %68 : vector<1xf32> to vector<1x1x1xf32>
    %70 = vector.extract %69[0, 0, 0] : f32 from vector<1x1x1xf32>
    %cst_26 = arith.constant 0.000000e+00 : f32
    %71 = vector.broadcast %cst_26 : f32 to vector<8x1xf32>
    %72 = arith.select %64, %58, %71 : vector<8x1xi1>, vector<8x1xf32>
    %73 = vector.shape_cast %72 : vector<8x1xf32> to vector<1x8x1xf32>
    %cst_27 = arith.constant dense<0.000000e+00> : vector<1xf32>
    %74 = vector.multi_reduction <add>, %73, %cst_27 [1, 2] : vector<1x8x1xf32> to vector<1xf32>
    %75 = vector.shape_cast %74 : vector<1xf32> to vector<1x1x1xf32>
    %76 = vector.extract %75[0, 0, 0] : f32 from vector<1x1x1xf32>
    %77 = vector.broadcast %70 : f32 to vector<1x8x128xf32>
    %c0_28 = arith.constant 0 : index
    %c0_29 = arith.constant 0 : index
    %c0_30 = arith.constant 0 : index
    %78 = vector.load %arg6[%c0_28, %c0_29, %c0_30] : memref<1x8x128xf32, #tpu.memory_space<vmem>>, vector<1x8x128xf32>
    tpu.vector_store %arg6[%c0_28, %c0_29, %c0_30], %77 {strides = array<i32>} : memref<1x8x128xf32, #tpu.memory_space<vmem>>, vector<1x8x128xf32>,
    %79 = vector.broadcast %76 : f32 to vector<1x8x128xf32>
    %c0_31 = arith.constant 0 : index
    %c0_32 = arith.constant 0 : index
    %c0_33 = arith.constant 0 : index
    %80 = vector.load %arg7[%c0_31, %c0_32, %c0_33] : memref<1x8x128xf32, #tpu.memory_space<vmem>>, vector<1x8x128xf32>
    tpu.vector_store %arg7[%c0_31, %c0_32, %c0_33], %79 {strides = array<i32>} : memref<1x8x128xf32, #tpu.memory_space<vmem>>, vector<1x8x128xf32>,
    return
  }
  func.func @transform_0(%arg0: i32) -> i32 {
    %c0_i32 = arith.constant 0 : i32
    %c0_i32_0 = arith.constant 0 : i32
    return %c0_i32 : i32
  }
  func.func @transform_1(%arg0: i32) -> (i32, i32) {
    %c0_i32 = arith.constant 0 : i32
    %c0_i32_0 = arith.constant 0 : i32
    return %arg0, %c0_i32 : i32, i32
  }
  func.func @transform_2(%arg0: i32) -> (i32, i32) {
    %c0_i32 = arith.constant 0 : i32
    %c0_i32_0 = arith.constant 0 : i32
    return %arg0, %c0_i32 : i32, i32
  }
  func.func @transform_3(%arg0: i32) -> (i32, i32) {
    %c0_i32 = arith.constant 0 : i32
    %c0_i32_0 = arith.constant 0 : i32
    %c0_i32_1 = arith.constant 0 : i32
    return %c0_i32, %c0_i32_0 : i32, i32
  }
  func.func @transform_4(%arg0: i32) -> (i32, i32) {
    %c0_i32 = arith.constant 0 : i32
    %c0_i32_0 = arith.constant 0 : i32
    %c0_i32_1 = arith.constant 0 : i32
    return %c0_i32, %c0_i32_0 : i32, i32
  }
  func.func @transform_5(%arg0: i32) -> (i32, i32, i32) {
    %c0_i32 = arith.constant 0 : i32
    %c0_i32_0 = arith.constant 0 : i32
    %c0_i32_1 = arith.constant 0 : i32
    return %arg0, %c0_i32, %c0_i32_0 : i32, i32, i32
  }
  func.func @transform_6(%arg0: i32) -> (i32, i32, i32) {
    %c0_i32 = arith.constant 0 : i32
    %c0_i32_0 = arith.constant 0 : i32
    %c0_i32_1 = arith.constant 0 : i32
    return %arg0, %c0_i32, %c0_i32_0 : i32, i32, i32
  }
}

</mosaic_0001>

<bundles_post_ra>
// kernel: tpu_custom_call.1
= control target key start
LH: loop header
LB: loop body
LE: loop exit
PB: predicated region body
PF: predicated region fallthrough
CT: control target
= control target key end

     0   :  { %s1138_s0 = inlined_call_operand.<no memory space> [shape: f32[1], index: 0, kind: input, shape index: {}]   ;;  %s1139_s1 = inlined_call_operand.vmem [shape: f32[24,128], index: 1, kind: input, shape index: {}]   ;;  %s1140_s2 = inlined_call_operand.vmem [shape: s32[24,1], index: 2, kind: input, shape index: {}]   ;;  %s1141_s3 = inlined_call_operand.hbm [shape: f32[128,128], index: 3, kind: input, shape index: {}]   ;;  %s1142_s4 = inlined_call_operand.vmem [shape: f32[1,128], index: 4, kind: input, shape index: {}]   ;;  %s1143_s5 = inlined_call_operand.hbm [shape: f32[3,8,128], index: 5, kind: output, shape index: {0}]   ;;  %s1144_s6 = inlined_call_operand.hbm [shape: f32[3,8,128], index: 6, kind: output, shape index: {1}]  }
   0x1   :  { %12 = sst [smem:[#allocation2]] %s1138_s0 }
   0x2   :  { %13 = vsyncpa [#allocation4], 0 }
   0x3   :  { %14 = vsyncpa [#allocation5], 0 }
   0x4   :  { %16 = vsyncpa [#allocation5 + $0x1], 0 }
   0x5   :  { %17 = vsyncpa [#allocation8], 0 }
   0x6   :  { %19 = vsyncpa [#allocation8 + $0x1], 0  ;;  %s955_s23 = smov 0   ;;  %s957_s24 = smov 0  }
   0x7   :  { %s959_s25 = smov 0   ;;  %s961_s26 = smov 0  }
   0x8 LB: > { %s976_s0 = sadd.s32 4294967295, %s906_s26   ;;  %s616_s27 = sadd.s32 4294967294, %s906_s26   ;;  %s906_s26 = sphi %s961_s26, %s1160_s26   ;;  %s902_s25 = sphi %s959_s25, %s1159_s25   ;;  %s898_s24 = sphi %s957_s24, %s1158_s24   ;;  %s894_s23 = sphi %s955_s23, %s1157_s23  }
   0x9   : > { %s980_s28 = sadd.s32 1, %s906_s26   ;;  %s147_s29 = sadd.s32 1, %s902_s25 }
   0xa   : > { %s144_s30 = ssub.s32 %s906_s26, %s980_s28  ;;  %p157_p0 = scmp.ne.s32.totalorder %s902_s25, %s898_s24 }
   0xb   : > { %p145_p1 = scmp.eq.s32.totalorder %s144_s30, 0  ;;  %p158_p2 = scmp.eq.s32.totalorder %s976_s0, 2 }
   0xc   : > { %p163_p3 = scmp.ne.s32.totalorder %s898_s24, %s894_s23  ;;  %p164_p4 = scmp.eq.s32.totalorder %s616_s27, 2 }
   0xd   : > { %s991_s7 = scalar_select %p145_p1, %s902_s25, %s147_s29  }
   0xe   : > { %p993_p5 = por %p158_p2, %p157_p0  ;;  %p997_p6 = por %p164_p4, %p163_p3 }
   0xf   : > { %p617_p7 = scmp.ge.s32.totalorder %s906_s26, 1  ;;  %p197_p8 = scmp.lt.s32.totalorder %s906_s26, 4 }
  0x10   : > { %s1148_s8 = scalar_select %p993_p5, 1, 0 }
  0x11   : > { %s1149_s9 = scalar_select %p997_p6, 1, 0 }
  0x12   : > { %p1145_p9 = scmp.eq.s32.totalorder %s976_s0, 0  ;;  %p1004_p10 = pnand %p617_p7, %p197_p8 }
  0x13   : > { %s908_s11 = smov [#allocation3]   ;;  %s780_s16 = scalar_lea.hbm %s1141_s3, 2048 }
  0x14   : > { %s1150_s10 = scalar_select %p1004_p10, 1, 0 }
  0x15   : > { %s212_s12 = sshll.u32 %s908_s11, 4  ;;  %p721_p11 = pneg %p1004_p10  ;;  %s213_s12 = int_to_ptr.vmem [resolvable:$true] %s212_s12 }
  0x16   : > { %p781_p13 = scmp.ne.s32.totalorder %s1141_s3, %s780_s16  ;;  %p787_p3 = scmp.lt.u32.totalorder %s780_s16, %s1141_s3 }
  0x17   : > { %p1012_p12 = pnand %p1145_p9, %p721_p11 }
  0x19   : > { %p782_p0 = pneg %p1012_p12 }
  0x1b   : > { %p783_p1 = pnand %p782_p0, %p781_p13 }
  0x1d   : > { %p784_p2 = pneg %p783_p1 }
  0x1f   : > { %p789_p4 = pnand %p787_p3, %p784_p2 }
  0x21   : > { %792 = shalt.err (!%p789_p4)
}
  0x22   : > { %s793_s21 = scalar_lea.vmem %s213_s12, 2048  ;;  %p801_p9 = scmp.lt.s32.totalorder %s213_s12, %s213_s12 }
  0x23   : > { %p794_p7 = scmp.ne.s32.totalorder %s213_s12, %s793_s21  ;;  %p802_p6 = scmp.lt.s32.totalorder %s793_s21, %s793_s21 }
  0x25   : > { %p796_p8 = pnand %p794_p7, %p782_p0  ;;  %p803_p5 = por %p802_p6, %p801_p9 }
  0x27   : > { %p797_p11 = pneg %p796_p8 }
  0x29   : > { %p804_p10 = pnand %p803_p5, %p797_p11 }
  0x2b   : > { %807 = shalt.err (!%p804_p10)
}
  0x2c   : > { %s909_s22 = smov 128   ;;  %s910_s27 = smov 8  }
  0x2d   : > { %724 = dma.hbm_to_vmem [thread:$0]  (!%p1012_p12), %s1141_s3, 2048, %s213_s12, [#allocation4], %s909_s22, %s909_s22, %s910_s27  }
  0x2e   : > { %p1152_p13 = scmp.ne.s32.totalorder %s1150_s10, 0 }
  0x2f   : > { %p1153_p1 = scmp.eq.s32.totalorder (!%p1152_p13), %s976_s0, 0 }
  0x30   : > { %245 = sbr.rel (%p1152_p13) target bundleno = 868 (0x364), region = 40 }
  0x37   : > { %881 = dma.done.wait (%p1153_p1), [#allocation4], 2048   ;;  %p1154_p0 = pmov %p1153_p1 }
  0x38   : > { %p283_p5 = scmp.lt.s32.totalorder %s976_s0, 2  ;;  %v911_v0 = vmov 0.0|0.0   ;;  %vm912_vm0 = vmmov 0   ;;  %v913_v1 = vmov 0.0   ;;  %v914_v2 = vmov 0   ;;  %v292_v3 = vld [vmem:[#allocation3] sm:$0xff] }
  0x39   : > { %883 = vsyncadd (%p1154_p0), [#allocation4], 4294965248  ;;  %685 = vmatprep.subr.bf16.mxu0 %v911_v0  ;;  %682 = vmatprep.mubr.msk.f32.mxu0 %vm912_vm0, %v913_v1  ;;  %v293_v4 = vld [vmem:[#allocation3 + $0x8] sm:$0xff]  ;;  %v294_v5 = vld [vmem:[#allocation3 + $0x10] sm:$0xff]  ;;  %v386_v30 = vlaneseq  ;;  %s431_s20 = sld [smem:[#allocation2]]  ;;  %s626_s22 = sshll.u32 %s976_s0, 3 }
  0x3a   : > { %s284_s11 = scalar_select %p283_p5, %s976_s0, 2  ;;  %774 = vset.pattern.permute.xlu1 %v914_v2  ;;  %775 = vset.pattern.permute.xlu0 %v914_v2  ;;  %v686_v6 = vpack.c.bf16 %v293_v4, %v292_v3  ;;  %v295_v7 = vld [vmem:[#allocation3 + $0x18] sm:$0xff]  ;;  %v296_v9 = vld [vmem:[#allocation3 + $0x20] sm:$0xff]  ;;  %v297_v10 = vld [vmem:[#allocation3 + $0x28] sm:$0xff]  ;;  %v439_v62 = vstv %s626_s22  ;;  %vm443_vm3 = vcmask 7168  }
  0x3b   : > { %v689_v8 = vpack.c.bf16 %v295_v7, %v294_v5  ;;  %v692_v14 = vpack.c.bf16 %v297_v10, %v296_v9  ;;  %v298_v15 = vld [vmem:[#allocation3 + $0x30] sm:$0xff]  ;;  %v299_v16 = vld [vmem:[#allocation3 + $0x38] sm:$0xff]  ;;  %v300_v18 = vld [vmem:[#allocation3 + $0x40] sm:$0xff]  ;;  %v387_v31 = vshrl.u32 %v386_v30, 7  ;;  %v395_v40 = vand.u32 127, %v386_v30  ;;  %s1051_s27 = sand.u32 1, %s898_s24  }
  0x3c   : > { %s624_s10 = sshll.u32 %s284_s11, 3  ;;  %687 = vmatpush3.bf16.msra.mxu0 %v686_v6  ;;  %v695_v17 = vpack.c.bf16 %v299_v16, %v298_v15  ;;  %v301_v19 = vld [vmem:[#allocation3 + $0x48] sm:$0xff]  ;;  %v302_v21 = vld [vmem:[#allocation3 + $0x50] sm:$0xff]  ;;  %v303_v22 = vld [vmem:[#allocation3 + $0x58] sm:$0xff]  ;;  %s622_s29 = sshll.u32 %s1051_s27, 3 }
  0x3d   : > { %s286_s14 = scalar_lea.vmem %s1139_s1, %s624_s10  ;;  %s290_s17 = scalar_lea.vmem %s1140_s2, %s624_s10  ;;  %688 = vmatprep.subr.bf16.mxu0 %v911_v0  ;;  %v698_v20 = vpack.c.bf16 %v301_v19, %v300_v18  ;;  %v701_v23 = vpack.c.bf16 %v303_v22, %v302_v21  ;;  %v304_v24 = vld [vmem:[#allocation3 + $0x60] sm:$0xff]  ;;  %v305_v25 = vld [vmem:[#allocation3 + $0x68] sm:$0xff]  ;;  %v306_v27 = vld [vmem:[#allocation3 + $0x70] sm:$0xff]  ;;  %v388_v34 = vsub.s32 0, %v387_v31  ;;  %v440_v3 = vadd.s32 %v439_v62, %v387_v31 }
  0x3e   : > { %v291_v11 = vld [vmem:[%s286_s14] sm:$0xff]  ;;  %v704_v26 = vpack.c.bf16 %v305_v25, %v304_v24  ;;  %v307_v28 = vld [vmem:[#allocation3 + $0x78] sm:$0xff]  ;;  %s629_s30 = sshll.u32 %s976_s0, 7  ;;  %s275_s11 = scalar_lea.vmem [#allocation6], %s622_s29 }
  0x3f   : > { %v308_v12 = vld [vmem:[%s290_s17] sm:$0xff]  ;;  %v380_v13 = vmul.f32 %v291_v11, %v291_v11  ;;  %v707_v29 = vpack.c.bf16 %v307_v28, %v306_v27  ;;  %s432_s21 = ssub.f32 1.0, %s431_s20  ;;  %vm441_vm2 = vcmp.lt.s32.totalorder %v440_v3, 20  ;;  %s488_s10 = sshll.u32 %s275_s11, 4  ;;  %s1065_s10 = int_to_ptr.vmem [resolvable:$true] %s488_s10 }
  0x40   : > { %397 = vperm.xlu1 %774, %v308_v12   ;;  %690 = vmatpush3.bf16.msra.mxu0 %v689_v8  ;;  %v309_v32 = vld [vmem:[%s1142_s4] sm:$0x1]  ;;  %s1055_s12 = scalar_lea.vmem [#allocation7], %s622_s29  ;;  %s1063_s16 = scalar_lea.hbm %s1143_s5, %s629_s30 }
  0x41   : > { %691 = vmatprep.subr.bf16.mxu0 %v911_v0  ;;  %381 = vadd.xlane.f32.xlu0 %v380_v13  ;;  %v383_v33 = vmul.f32 0.03125, %v309_v32  ;;  %v417_v45 = vrot.slane %v309_v32, %v388_v34  ;;  %v433_v60 = vstv %s432_s21  ;;  %s501_s13 = sshll.u32 %s1055_s12, 4  ;;  %s470_s18 = scalar_lea.sflag [#allocation5], %s1051_s27  ;;  %s1067_s13 = int_to_ptr.vmem [resolvable:$true] %s501_s13 }
  0x42   : > { %s808_s19 = scalar_lea.vmem %s1065_s10, 128  ;;  %p1155_p9 = scmp.ne.s32.totalorder %s1148_s8, 0 }
  0x43   : > { %v389_v37 = vrot.slane %v383_v33, %v388_v34  ;;  %p809_p6 = scmp.ne.s32.totalorder %s1065_s10, %s808_s19  ;;  %s915_s20 = smov [#allocation6]  }
  0x44   : > { %693 = vmatpush3.bf16.msra.mxu0 %v692_v14  ;;  %s812_s21 = sshll.u32 %s915_s20, 4  ;;  %s813_s21 = int_to_ptr.vmem [resolvable:$false] %s812_s21 }
  0x45   : > { %694 = vmatprep.subr.bf16.mxu0 %v911_v0  ;;  %p810_p10 = pnand %p809_p6, %p1155_p9  ;;  %s814_s22 = scalar_lea.vmem %s813_s21, 256 }
  0x46   : > { %p815_p2 = scmp.lt.s32.totalorder %s1065_s10, %s813_s21  ;;  %p816_p3 = scmp.lt.s32.totalorder %s814_s22, %s808_s19 }
  0x47   : > { %p811_p12 = pneg %p810_p10 }
  0x48   : > { %696 = vmatpush3.bf16.msra.mxu0 %v695_v17  ;;  %p817_p4 = por %p816_p3, %p815_p2 }
  0x49   : > { %697 = vmatprep.subr.bf16.mxu0 %v911_v0 }
  0x4a   : > { %p818_p7 = pnand %p817_p4, %p811_p12 }
  0x4c   : > { %699 = vmatpush3.bf16.msra.mxu0 %v698_v20 }
  0x4d   : > { %700 = vmatprep.subr.bf16.mxu0 %v911_v0 }
  0x50   : > { %702 = vmatpush3.bf16.msra.mxu0 %v701_v23 }
  0x51   : > { %703 = vmatprep.subr.bf16.mxu0 %v911_v0 }
  0x54   : > { %705 = vmatpush3.bf16.msra.mxu0 %v704_v26 }
  0x55   : > { %706 = vmatprep.subr.bf16.mxu0 %v911_v0 }
  0x58   : > { %708 = vmatpush3.bf16.msra.mxu0 %v707_v29 }
  0x5b   : > { %683 = vmatmul.mubr.f32.vlgmr.msra.gmra.mrb[0].mxu0 %v291_v11 }
  0xbf   : > { %v398_v43 = vpop.permute.xlu1 %397 }
  0xc0   : > { %vm399_vm1 = vcmp.eq.s32.totalorder %v395_v40, %v398_v43 }
  0xc1   : > { %v419_v47 = vsel %vm399_vm1, %v417_v45, 0.0 }
  0xce   : > { %v382_v35 = vpop.xlane.xlu0 %381 }
  0xcf   : > { %v384_v36 = vmul.f32 0.03125, %v382_v35 }
  0xd1   : > { %v391_v38 = vadd.f32 %v389_v37, %v384_v36 }
 0x12e   : > { %v376_v39 = vpop.f32.mrb[0].mxu0 }
 0x12f   : > { %v392_v41 = vmul.f32 1.0625, %v376_v39  ;;  %v684_v42 = vpop.f32.mrb[1].mxu0  ;;  %v410_v46 = vsel %vm399_vm1, %v376_v39, 0.0 }
 0x131   : > { %v393_v44 = vsub.f32 %v391_v38, %v392_v41 }
 0x133   : > { %400 = vmax.xlane.f32.xlu0 %v393_v44 }
 0x137   : > { %411 = vadd.xlane.f32.xlu0 %v410_v46 }
 0x13b   : > { %420 = vadd.xlane.f32.xlu0 %v419_v47 }
 0x1c0   : > { %v401_v48 = vpop.xlane.xlu0 %400 }
 0x1c1   : > { %v402_v49 = vsub.f32 %v393_v44, %v401_v48 }
 0x1c3   : > { %v403_v50 = vmul.f32 1.442695, %v402_v49 }
 0x1c4   : > { %v412_v52 = vpop.xlane.xlu0 %411 }
 0x1c5   : > { %776 = vpow2.f32 %v403_v50  ;;  %v427_v53 = vmul.f32 2.0, %v412_v52  ;;  %v424_v0 = vmul.f32 1.0625, %v412_v52 }
 0x1c7   : > { %v428_v54 = vsub.f32 %v382_v35, %v427_v53 }
 0x1c8   : > { %v421_v56 = vpop.xlane.xlu0 %420 }
 0x1c9   : > { %v429_v57 = vadd.f32 %v428_v54, %v421_v56  ;;  %v422_v58 = vmul.f32 0.03125, %v421_v56 }
 0x1cb   : > { %v430_v59 = vmul.f32 0.03125, %v429_v57  ;;  %v423_v61 = vadd.f32 %v422_v58, %v384_v36 }
 0x1cd   : > { %v434_v2 = vadd.f32 %v433_v60, %v430_v59  ;;  %v425_v5 = vsub.f32 %v423_v61, %v424_v0 }
 0x1cf   : > { %v777_v51 = vpop.eup %776  ;;  %v435_v7 = vmax.f32 %v434_v2, 0.0 }
 0x1d0   : > { %405 = vadd.xlane.f32.xlu1 %v777_v51 }
 0x1d1   : > { %v454_v10 = vsel %vm441_vm2, %v435_v7, 0.0 }
 0x1d2   : > { %v455_v11 = vsel %vm443_vm3, %v454_v10, 0.0 }
 0x25d   : > { %v406_v55 = vpop.xlane.xlu1 %405 }
 0x25e   : > { %778 = vlog2.f32 %v406_v55 }
 0x268   : > { %v779_v63 = vpop.eup %778 }
 0x269   : > { %v408_v1 = vmul.f32 0.6931472, %v779_v63 }
 0x26b   : > { %v409_v4 = vadd.f32 %v408_v1, %v401_v48 }
 0x26d   : > { %v426_v6 = vsub.f32 %v409_v4, %v425_v5 }
 0x26f   : > { %v442_v8 = vsel %vm441_vm2, %v426_v6, 0.0 }
 0x270   : > { %v444_v9 = vsel %vm443_vm3, %v442_v8, 0.0 }
 0x271   : > { %445 = vadd.xlane.f32.xlu0 %v444_v9 }
 0x275   : > { %456 = vadd.xlane.f32.xlu0 %v455_v11 }
 0x2fe   : > { %v446_v12 = vpop.xlane.xlu0 %445 }
 0x2ff   : > { %v447_v13 = vrot.slane %v446_v12, 4 }
 0x301   : > { %v448_v14 = vadd.f32 %v447_v13, %v446_v12 }
 0x302   : > { %v457_v15 = vpop.xlane.xlu0 %456 }
 0x303   : > { %v449_v16 = vrot.slane %v448_v14, 2  ;;  %v458_v17 = vrot.slane %v457_v15, 4 }
 0x305   : > { %v459_v18 = vadd.f32 %v458_v17, %v457_v15  ;;  %v450_v19 = vadd.f32 %v449_v16, %v448_v14 }
 0x307   : > { %v460_v20 = vrot.slane %v459_v18, 2  ;;  %v451_v21 = vrot.slane %v450_v19, 1 }
 0x309   : > { %v461_v22 = vadd.f32 %v460_v20, %v459_v18  ;;  %v452_v23 = vadd.f32 %v451_v21, %v450_v19 }
 0x30b   : > { %709 = vpush %v452_v23  ;;  %v462_v24 = vrot.slane %v461_v22, 1 }
 0x30d   : > { %v463_v25 = vadd.f32 %v462_v24, %v461_v22 }
 0x30f   : > { %711 = vpush %v463_v25 }
 0x33c   : > { %s710_s17 = spop %709 }
 0x33d   : > { %v465_v26 = vstv %s710_s17 }
 0x33e   : > { %466 = vst [vmem:[%s275_s11] sm:$0xff] %v465_v26 }
 0x33f   : > { %821 = shalt.err (!%p818_p7)
}
 0x340   : > { %s822_s29 = scalar_lea.hbm %s1063_s16, 128  ;;  %s826_s15 = scalar_lea.hbm %s1143_s5, 384 }
 0x341   : > { %p823_p8 = scmp.ne.s32.totalorder %s1063_s16, %s822_s29  ;;  %p827_p1 = scmp.lt.u32.totalorder %s1063_s16, %s1143_s5 }
 0x342   : > { %p828_p0 = scmp.lt.u32.totalorder %s826_s15, %s822_s29  ;;  %p830_p6 = scmp.lt.u32.totalorder %s822_s29, %s1063_s16 }
 0x343   : > { %p824_p11 = pnand %p823_p8, %p1155_p9 }
 0x344   : > { %p829_p5 = por %p828_p0, %p827_p1 }
 0x345   : > { %p825_p13 = pneg %p824_p11 }
 0x346   : > { %p831_p10 = por %p830_p6, %p829_p5 }
 0x348   : > { %p832_p12 = pnand %p831_p10, %p825_p13 }
 0x34a   : > { %835 = shalt.err (!%p832_p12)
}
 0x34b   : > { %717 = dma.vmem_to_hbm [thread:$0]  (%p1155_p9), %s1065_s10, 128, %s1063_s16, %s470_s18  }
 0x34c   : > { %s712_s19 = spop %711  ;;  %s1096_s29 = scalar_lea.hbm %s1144_s6, %s629_s30 }
 0x34d   : > { %v467_v27 = vstv %s712_s19  ;;  %s475_s11 = scalar_lea.sflag [#allocation8], %s1051_s27  ;;  %s836_s14 = scalar_lea.vmem %s1067_s13, 128 }
 0x34e   : > { %468 = vst [vmem:[%s1055_s12] sm:$0xff] %v467_v27  ;;  %p837_p2 = scmp.ne.s32.totalorder %s1067_s13, %s836_s14  ;;  %s916_s15 = smov [#allocation7]  }
 0x34f   : > { %s840_s17 = sshll.u32 %s916_s15, 4  ;;  %s841_s17 = int_to_ptr.vmem [resolvable:$false] %s840_s17 }
 0x350   : > { %p838_p3 = pnand %p837_p2, %p1155_p9  ;;  %s842_s20 = scalar_lea.vmem %s841_s17, 256 }
 0x351   : > { %p843_p7 = scmp.lt.s32.totalorder %s1067_s13, %s841_s17  ;;  %p844_p8 = scmp.lt.s32.totalorder %s842_s20, %s836_s14 }
 0x352   : > { %p839_p4 = pneg %p838_p3 }
 0x353   : > { %p845_p11 = por %p844_p8, %p843_p7 }
 0x355   : > { %p846_p13 = pnand %p845_p11, %p839_p4 }
 0x357   : > { %849 = shalt.err (!%p846_p13)
}
 0x358   : > { %s850_s0 = scalar_lea.hbm %s1096_s29, 128  ;;  %s854_s10 = scalar_lea.hbm %s1144_s6, 384 }
 0x359   : > { %p851_p1 = scmp.ne.s32.totalorder %s1096_s29, %s850_s0  ;;  %p855_p6 = scmp.lt.u32.totalorder %s1096_s29, %s1144_s6 }
 0x35a   : > { %p856_p10 = scmp.lt.u32.totalorder %s854_s10, %s850_s0  ;;  %p858_p2 = scmp.lt.u32.totalorder %s850_s0, %s1096_s29 }
 0x35b   : > { %p852_p0 = pnand %p851_p1, %p1155_p9 }
 0x35c   : > { %p857_p12 = por %p856_p10, %p855_p6 }
 0x35d   : > { %p853_p5 = pneg %p852_p0 }
 0x35e   : > { %p859_p3 = por %p858_p2, %p857_p12 }
 0x360   : > { %p860_p4 = pnand %p859_p3, %p853_p5 }
 0x362   : > { %863 = shalt.err (!%p860_p4)
}
 0x363   : > { %718 = dma.vmem_to_hbm [thread:$0]  (%p1155_p9), %s1067_s13, 128, %s1096_s29, %s475_s11  }
 0x364 PF: > { %p734_p7 = scmp.ge.s32.totalorder %s906_s26, 2  ;;  %s513_s18 = sand.u32 1, %s894_s23  }
 0x365   : > { %p1156_p8 = scmp.ne.s32.totalorder %s1149_s9, 0  ;;  %s514_s19 = scalar_lea.sflag [#allocation5], %s513_s18 }
 0x367   : > { %p726_p11 = pnand %p734_p7, %p1156_p8 }
 0x369   : > { %885 = dma.done.wait (!%p726_p11), %s514_s19, 128  }
 0x36a   : > { %887 = vsyncadd (!%p726_p11), %s514_s19, 4294967168  ;;  %s523_s21 = scalar_lea.sflag [#allocation8], %s513_s18 }
 0x36b   : > { %889 = dma.done.wait (!%p726_p11), %s523_s21, 128  }
 0x36c   : > { %891 = vsyncadd (!%p726_p11), %s523_s21, 4294967168  ;;  %p22_p9 = scmp.ge.s32.totalorder %s980_s28, 5   ;;  %s1157_s23 = smov %s898_s24 }
 0x36d   : > { %s1158_s24 = smov %s902_s25  ;;  %s1159_s25 = smov %s991_s7 }
 0x36e   : > { %s1160_s26 = smov %s980_s28  ;;  %24 = sbr.rel (!%p22_p9) target bundleno = 8 (0x8), region = 100 }
 0x375   :  { %528 = vsyncpa [#allocation4], 1 }
 0x376   :  { %530 = vsyncpa [#allocation4 + $0x1], 1 }
 0x377   :  { %531 = vsyncpa [#allocation5], 1 }
 0x378   :  { %533 = vsyncpa [#allocation5 + $0x1], 1 }
 0x379   :  { %534 = vsyncpa [#allocation8], 1 }
 0x37a   :  { %536 = vsyncpa [#allocation8 + $0x1], 1 }

// kernel: tpu_custom_call.1
= control target key start
LH: loop header
LB: loop body
LE: loop exit
PB: predicated region body
PF: predicated region fallthrough
CT: control target
= control target key end

     0   :  { %s1138_s0 = inlined_call_operand.<no memory space> [shape: f32[1], index: 0, kind: input, shape index: {}]   ;;  %s1139_s1 = inlined_call_operand.vmem [shape: f32[24,128], index: 1, kind: input, shape index: {}]   ;;  %s1140_s2 = inlined_call_operand.vmem [shape: s32[24,1], index: 2, kind: input, shape index: {}]   ;;  %s1141_s3 = inlined_call_operand.hbm [shape: f32[128,128], index: 3, kind: input, shape index: {}]   ;;  %s1142_s4 = inlined_call_operand.vmem [shape: f32[1,128], index: 4, kind: input, shape index: {}]   ;;  %s1143_s5 = inlined_call_operand.hbm [shape: f32[3,8,128], index: 5, kind: output, shape index: {0}]   ;;  %s1144_s6 = inlined_call_operand.hbm [shape: f32[3,8,128], index: 6, kind: output, shape index: {1}]  }
   0x1   :  { %12 = sst [smem:[#allocation2]] %s1138_s0 }
   0x2   :  { %13 = vsyncpa [#allocation4], 0 }
   0x3   :  { %14 = vsyncpa [#allocation5], 0 }
   0x4   :  { %16 = vsyncpa [#allocation5 + $0x1], 0 }
   0x5   :  { %17 = vsyncpa [#allocation8], 0 }
   0x6   :  { %19 = vsyncpa [#allocation8 + $0x1], 0  ;;  %s955_s23 = smov 0   ;;  %s957_s24 = smov 0  }
   0x7   :  { %s959_s25 = smov 0   ;;  %s961_s26 = smov 0  }
   0x8 LB: > { %s976_s0 = sadd.s32 4294967295, %s906_s26   ;;  %s616_s27 = sadd.s32 4294967294, %s906_s26   ;;  %s906_s26 = sphi %s961_s26, %s1160_s26   ;;  %s902_s25 = sphi %s959_s25, %s1159_s25   ;;  %s898_s24 = sphi %s957_s24, %s1158_s24   ;;  %s894_s23 = sphi %s955_s23, %s1157_s23  }
   0x9   : > { %s980_s28 = sadd.s32 1, %s906_s26   ;;  %s147_s29 = sadd.s32 1, %s902_s25 }
   0xa   : > { %s144_s30 = ssub.s32 %s906_s26, %s980_s28  ;;  %p157_p0 = scmp.ne.s32.totalorder %s902_s25, %s898_s24 }
   0xb   : > { %p145_p1 = scmp.eq.s32.totalorder %s144_s30, 0  ;;  %p158_p2 = scmp.eq.s32.totalorder %s976_s0, 2 }
   0xc   : > { %p163_p3 = scmp.ne.s32.totalorder %s898_s24, %s894_s23  ;;  %p164_p4 = scmp.eq.s32.totalorder %s616_s27, 2 }
   0xd   : > { %s991_s7 = scalar_select %p145_p1, %s902_s25, %s147_s29  }
   0xe   : > { %p993_p5 = por %p158_p2, %p157_p0  ;;  %p997_p6 = por %p164_p4, %p163_p3 }
   0xf   : > { %p617_p7 = scmp.ge.s32.totalorder %s906_s26, 1  ;;  %p197_p8 = scmp.lt.s32.totalorder %s906_s26, 4 }
  0x10   : > { %s1148_s8 = scalar_select %p993_p5, 1, 0 }
  0x11   : > { %s1149_s9 = scalar_select %p997_p6, 1, 0 }
  0x12   : > { %p1145_p9 = scmp.eq.s32.totalorder %s976_s0, 0  ;;  %p1004_p10 = pnand %p617_p7, %p197_p8 }
  0x13   : > { %s908_s11 = smov [#allocation3]   ;;  %s780_s16 = scalar_lea.hbm %s1141_s3, 2048 }
  0x14   : > { %s1150_s10 = scalar_select %p1004_p10, 1, 0 }
  0x15   : > { %s212_s12 = sshll.u32 %s908_s11, 4  ;;  %p721_p11 = pneg %p1004_p10  ;;  %s213_s12 = int_to_ptr.vmem [resolvable:$true] %s212_s12 }
  0x16   : > { %p781_p13 = scmp.ne.s32.totalorder %s1141_s3, %s780_s16  ;;  %p787_p3 = scmp.lt.u32.totalorder %s780_s16, %s1141_s3 }
  0x17   : > { %p1012_p12 = pnand %p1145_p9, %p721_p11 }
  0x19   : > { %p782_p0 = pneg %p1012_p12 }
  0x1b   : > { %p783_p1 = pnand %p782_p0, %p781_p13 }
  0x1d   : > { %p784_p2 = pneg %p783_p1 }
  0x1f   : > { %p789_p4 = pnand %p787_p3, %p784_p2 }
  0x21   : > { %792 = shalt.err (!%p789_p4)
}
  0x22   : > { %s793_s21 = scalar_lea.vmem %s213_s12, 2048  ;;  %p801_p9 = scmp.lt.s32.totalorder %s213_s12, %s213_s12 }
  0x23   : > { %p794_p7 = scmp.ne.s32.totalorder %s213_s12, %s793_s21  ;;  %p802_p6 = scmp.lt.s32.totalorder %s793_s21, %s793_s21 }
  0x25   : > { %p796_p8 = pnand %p794_p7, %p782_p0  ;;  %p803_p5 = por %p802_p6, %p801_p9 }
  0x27   : > { %p797_p11 = pneg %p796_p8 }
  0x29   : > { %p804_p10 = pnand %p803_p5, %p797_p11 }
  0x2b   : > { %807 = shalt.err (!%p804_p10)
}
  0x2c   : > { %s909_s22 = smov 128   ;;  %s910_s27 = smov 8  }
  0x2d   : > { %724 = dma.hbm_to_vmem [thread:$0]  (!%p1012_p12), %s1141_s3, 2048, %s213_s12, [#allocation4], %s909_s22, %s909_s22, %s910_s27  }
  0x2e   : > { %p1152_p13 = scmp.ne.s32.totalorder %s1150_s10, 0 }
  0x2f   : > { %p1153_p1 = scmp.eq.s32.totalorder (!%p1152_p13), %s976_s0, 0 }
  0x30   : > { %245 = sbr.rel (%p1152_p13) target bundleno = 868 (0x364), region = 40 }
  0x37   : > { %881 = dma.done.wait (%p1153_p1), [#allocation4], 2048   ;;  %p1154_p0 = pmov %p1153_p1 }
  0x38   : > { %p283_p5 = scmp.lt.s32.totalorder %s976_s0, 2  ;;  %v911_v0 = vmov 0.0|0.0   ;;  %vm912_vm0 = vmmov 0   ;;  %v913_v1 = vmov 0.0   ;;  %v914_v2 = vmov 0   ;;  %v292_v3 = vld [vmem:[#allocation3] sm:$0xff] }
  0x39   : > { %883 = vsyncadd (%p1154_p0), [#allocation4], 4294965248  ;;  %685 = vmatprep.subr.bf16.mxu0 %v911_v0  ;;  %682 = vmatprep.mubr.msk.f32.mxu0 %vm912_vm0, %v913_v1  ;;  %v293_v4 = vld [vmem:[#allocation3 + $0x8] sm:$0xff]  ;;  %v294_v5 = vld [vmem:[#allocation3 + $0x10] sm:$0xff]  ;;  %v386_v30 = vlaneseq  ;;  %s431_s20 = sld [smem:[#allocation2]]  ;;  %s626_s22 = sshll.u32 %s976_s0, 3 }
  0x3a   : > { %s284_s11 = scalar_select %p283_p5, %s976_s0, 2  ;;  %774 = vset.pattern.permute.xlu1 %v914_v2  ;;  %775 = vset.pattern.permute.xlu0 %v914_v2  ;;  %v686_v6 = vpack.c.bf16 %v293_v4, %v292_v3  ;;  %v295_v7 = vld [vmem:[#allocation3 + $0x18] sm:$0xff]  ;;  %v296_v9 = vld [vmem:[#allocation3 + $0x20] sm:$0xff]  ;;  %v297_v10 = vld [vmem:[#allocation3 + $0x28] sm:$0xff]  ;;  %v439_v62 = vstv %s626_s22  ;;  %vm443_vm3 = vcmask 7168  }
  0x3b   : > { %v689_v8 = vpack.c.bf16 %v295_v7, %v294_v5  ;;  %v692_v14 = vpack.c.bf16 %v297_v10, %v296_v9  ;;  %v298_v15 = vld [vmem:[#allocation3 + $0x30] sm:$0xff]  ;;  %v299_v16 = vld [vmem:[#allocation3 + $0x38] sm:$0xff]  ;;  %v300_v18 = vld [vmem:[#allocation3 + $0x40] sm:$0xff]  ;;  %v387_v31 = vshrl.u32 %v386_v30, 7  ;;  %v395_v40 = vand.u32 127, %v386_v30  ;;  %s1051_s27 = sand.u32 1, %s898_s24  }
  0x3c   : > { %s624_s10 = sshll.u32 %s284_s11, 3  ;;  %687 = vmatpush3.bf16.msra.mxu0 %v686_v6  ;;  %v695_v17 = vpack.c.bf16 %v299_v16, %v298_v15  ;;  %v301_v19 = vld [vmem:[#allocation3 + $0x48] sm:$0xff]  ;;  %v302_v21 = vld [vmem:[#allocation3 + $0x50] sm:$0xff]  ;;  %v303_v22 = vld [vmem:[#allocation3 + $0x58] sm:$0xff]  ;;  %s622_s29 = sshll.u32 %s1051_s27, 3 }
  0x3d   : > { %s286_s14 = scalar_lea.vmem %s1139_s1, %s624_s10  ;;  %s290_s17 = scalar_lea.vmem %s1140_s2, %s624_s10  ;;  %688 = vmatprep.subr.bf16.mxu0 %v911_v0  ;;  %v698_v20 = vpack.c.bf16 %v301_v19, %v300_v18  ;;  %v701_v23 = vpack.c.bf16 %v303_v22, %v302_v21  ;;  %v304_v24 = vld [vmem:[#allocation3 + $0x60] sm:$0xff]  ;;  %v305_v25 = vld [vmem:[#allocation3 + $0x68] sm:$0xff]  ;;  %v306_v27 = vld [vmem:[#allocation3 + $0x70] sm:$0xff]  ;;  %v388_v34 = vsub.s32 0, %v387_v31  ;;  %v440_v3 = vadd.s32 %v439_v62, %v387_v31 }
  0x3e   : > { %v291_v11 = vld [vmem:[%s286_s14] sm:$0xff]  ;;  %v704_v26 = vpack.c.bf16 %v305_v25, %v304_v24  ;;  %v307_v28 = vld [vmem:[#allocation3 + $0x78] sm:$0xff]  ;;  %s629_s30 = sshll.u32 %s976_s0, 7  ;;  %s275_s11 = scalar_lea.vmem [#allocation6], %s622_s29 }
  0x3f   : > { %v308_v12 = vld [vmem:[%s290_s17] sm:$0xff]  ;;  %v380_v13 = vmul.f32 %v291_v11, %v291_v11  ;;  %v707_v29 = vpack.c.bf16 %v307_v28, %v306_v27  ;;  %s432_s21 = ssub.f32 1.0, %s431_s20  ;;  %vm441_vm2 = vcmp.lt.s32.totalorder %v440_v3, 20  ;;  %s488_s10 = sshll.u32 %s275_s11, 4  ;;  %s1065_s10 = int_to_ptr.vmem [resolvable:$true] %s488_s10 }
  0x40   : > { %397 = vperm.xlu1 %774, %v308_v12   ;;  %690 = vmatpush3.bf16.msra.mxu0 %v689_v8  ;;  %v309_v32 = vld [vmem:[%s1142_s4] sm:$0x1]  ;;  %s1055_s12 = scalar_lea.vmem [#allocation7], %s622_s29  ;;  %s1063_s16 = scalar_lea.hbm %s1143_s5, %s629_s30 }
  0x41   : > { %691 = vmatprep.subr.bf16.mxu0 %v911_v0  ;;  %381 = vadd.xlane.f32.xlu0 %v380_v13  ;;  %v383_v33 = vmul.f32 0.03125, %v309_v32  ;;  %v417_v45 = vrot.slane %v309_v32, %v388_v34  ;;  %v433_v60 = vstv %s432_s21  ;;  %s501_s13 = sshll.u32 %s1055_s12, 4  ;;  %s470_s18 = scalar_lea.sflag [#allocation5], %s1051_s27  ;;  %s1067_s13 = int_to_ptr.vmem [resolvable:$true] %s501_s13 }
  0x42   : > { %s808_s19 = scalar_lea.vmem %s1065_s10, 128  ;;  %p1155_p9 = scmp.ne.s32.totalorder %s1148_s8, 0 }
  0x43   : > { %v389_v37 = vrot.slane %v383_v33, %v388_v34  ;;  %p809_p6 = scmp.ne.s32.totalorder %s1065_s10, %s808_s19  ;;  %s915_s20 = smov [#allocation6]  }
  0x44   : > { %693 = vmatpush3.bf16.msra.mxu0 %v692_v14  ;;  %s812_s21 = sshll.u32 %s915_s20, 4  ;;  %s813_s21 = int_to_ptr.vmem [resolvable:$false] %s812_s21 }
  0x45   : > { %694 = vmatprep.subr.bf16.mxu0 %v911_v0  ;;  %p810_p10 = pnand %p809_p6, %p1155_p9  ;;  %s814_s22 = scalar_lea.vmem %s813_s21, 256 }
  0x46   : > { %p815_p2 = scmp.lt.s32.totalorder %s1065_s10, %s813_s21  ;;  %p816_p3 = scmp.lt.s32.totalorder %s814_s22, %s808_s19 }
  0x47   : > { %p811_p12 = pneg %p810_p10 }
  0x48   : > { %696 = vmatpush3.bf16.msra.mxu0 %v695_v17  ;;  %p817_p4 = por %p816_p3, %p815_p2 }
  0x49   : > { %697 = vmatprep.subr.bf16.mxu0 %v911_v0 }
  0x4a   : > { %p818_p7 = pnand %p817_p4, %p811_p12 }
  0x4c   : > { %699 = vmatpush3.bf16.msra.mxu0 %v698_v20 }
  0x4d   : > { %700 = vmatprep.subr.bf16.mxu0 %v911_v0 }
  0x50   : > { %702 = vmatpush3.bf16.msra.mxu0 %v701_v23 }
  0x51   : > { %703 = vmatprep.subr.bf16.mxu0 %v911_v0 }
  0x54   : > { %705 = vmatpush3.bf16.msra.mxu0 %v704_v26 }
  0x55   : > { %706 = vmatprep.subr.bf16.mxu0 %v911_v0 }
  0x58   : > { %708 = vmatpush3.bf16.msra.mxu0 %v707_v29 }
  0x5b   : > { %683 = vmatmul.mubr.f32.vlgmr.msra.gmra.mrb[0].mxu0 %v291_v11 }
  0xbf   : > { %v398_v43 = vpop.permute.xlu1 %397 }
  0xc0   : > { %vm399_vm1 = vcmp.eq.s32.totalorder %v395_v40, %v398_v43 }
  0xc1   : > { %v419_v47 = vsel %vm399_vm1, %v417_v45, 0.0 }
  0xce   : > { %v382_v35 = vpop.xlane.xlu0 %381 }
  0xcf   : > { %v384_v36 = vmul.f32 0.03125, %v382_v35 }
  0xd1   : > { %v391_v38 = vadd.f32 %v389_v37, %v384_v36 }
 0x12e   : > { %v376_v39 = vpop.f32.mrb[0].mxu0 }
 0x12f   : > { %v392_v41 = vmul.f32 1.0625, %v376_v39  ;;  %v684_v42 = vpop.f32.mrb[1].mxu0  ;;  %v410_v46 = vsel %vm399_vm1, %v376_v39, 0.0 }
 0x131   : > { %v393_v44 = vsub.f32 %v391_v38, %v392_v41 }
 0x133   : > { %400 = vmax.xlane.f32.xlu0 %v393_v44 }
 0x137   : > { %411 = vadd.xlane.f32.xlu0 %v410_v46 }
 0x13b   : > { %420 = vadd.xlane.f32.xlu0 %v419_v47 }
 0x1c0   : > { %v401_v48 = vpop.xlane.xlu0 %400 }
 0x1c1   : > { %v402_v49 = vsub.f32 %v393_v44, %v401_v48 }
 0x1c3   : > { %v403_v50 = vmul.f32 1.442695, %v402_v49 }
 0x1c4   : > { %v412_v52 = vpop.xlane.xlu0 %411 }
 0x1c5   : > { %776 = vpow2.f32 %v403_v50  ;;  %v427_v53 = vmul.f32 2.0, %v412_v52  ;;  %v424_v0 = vmul.f32 1.0625, %v412_v52 }
 0x1c7   : > { %v428_v54 = vsub.f32 %v382_v35, %v427_v53 }
 0x1c8   : > { %v421_v56 = vpop.xlane.xlu0 %420 }
 0x1c9   : > { %v429_v57 = vadd.f32 %v428_v54, %v421_v56  ;;  %v422_v58 = vmul.f32 0.03125, %v421_v56 }
 0x1cb   : > { %v430_v59 = vmul.f32 0.03125, %v429_v57  ;;  %v423_v61 = vadd.f32 %v422_v58, %v384_v36 }
 0x1cd   : > { %v434_v2 = vadd.f32 %v433_v60, %v430_v59  ;;  %v425_v5 = vsub.f32 %v423_v61, %v424_v0 }
 0x1cf   : > { %v777_v51 = vpop.eup %776  ;;  %v435_v7 = vmax.f32 %v434_v2, 0.0 }
 0x1d0   : > { %405 = vadd.xlane.f32.xlu1 %v777_v51 }
 0x1d1   : > { %v454_v10 = vsel %vm441_vm2, %v435_v7, 0.0 }
 0x1d2   : > { %v455_v11 = vsel %vm443_vm3, %v454_v10, 0.0 }
 0x25d   : > { %v406_v55 = vpop.xlane.xlu1 %405 }
 0x25e   : > { %778 = vlog2.f32 %v406_v55 }
 0x268   : > { %v779_v63 = vpop.eup %778 }
 0x269   : > { %v408_v1 = vmul.f32 0.6931472, %v779_v63 }
 0x26b   : > { %v409_v4 = vadd.f32 %v408_v1, %v401_v48 }
 0x26d   : > { %v426_v6 = vsub.f32 %v409_v4, %v425_v5 }
 0x26f   : > { %v442_v8 = vsel %vm441_vm2, %v426_v6, 0.0 }
 0x270   : > { %v444_v9 = vsel %vm443_vm3, %v442_v8, 0.0 }
 0x271   : > { %445 = vadd.xlane.f32.xlu0 %v444_v9 }
 0x275   : > { %456 = vadd.xlane.f32.xlu0 %v455_v11 }
 0x2fe   : > { %v446_v12 = vpop.xlane.xlu0 %445 }
 0x2ff   : > { %v447_v13 = vrot.slane %v446_v12, 4 }
 0x301   : > { %v448_v14 = vadd.f32 %v447_v13, %v446_v12 }
 0x302   : > { %v457_v15 = vpop.xlane.xlu0 %456 }
 0x303   : > { %v449_v16 = vrot.slane %v448_v14, 2  ;;  %v458_v17 = vrot.slane %v457_v15, 4 }
 0x305   : > { %v459_v18 = vadd.f32 %v458_v17, %v457_v15  ;;  %v450_v19 = vadd.f32 %v449_v16, %v448_v14 }
 0x307   : > { %v460_v20 = vrot.slane %v459_v18, 2  ;;  %v451_v21 = vrot.slane %v450_v19, 1 }
 0x309   : > { %v461_v22 = vadd.f32 %v460_v20, %v459_v18  ;;  %v452_v23 = vadd.f32 %v451_v21, %v450_v19 }
 0x30b   : > { %709 = vpush %v452_v23  ;;  %v462_v24 = vrot.slane %v461_v22, 1 }
 0x30d   : > { %v463_v25 = vadd.f32 %v462_v24, %v461_v22 }
 0x30f   : > { %711 = vpush %v463_v25 }
 0x33c   : > { %s710_s17 = spop %709 }
 0x33d   : > { %v465_v26 = vstv %s710_s17 }
 0x33e   : > { %466 = vst [vmem:[%s275_s11] sm:$0xff] %v465_v26 }
 0x33f   : > { %821 = shalt.err (!%p818_p7)
}
 0x340   : > { %s822_s29 = scalar_lea.hbm %s1063_s16, 128  ;;  %s826_s15 = scalar_lea.hbm %s1143_s5, 384 }
 0x341   : > { %p823_p8 = scmp.ne.s32.totalorder %s1063_s16, %s822_s29  ;;  %p827_p1 = scmp.lt.u32.totalorder %s1063_s16, %s1143_s5 }
 0x342   : > { %p828_p0 = scmp.lt.u32.totalorder %s826_s15, %s822_s29  ;;  %p830_p6 = scmp.lt.u32.totalorder %s822_s29, %s1063_s16 }
 0x343   : > { %p824_p11 = pnand %p823_p8, %p1155_p9 }
 0x344   : > { %p829_p5 = por %p828_p0, %p827_p1 }
 0x345   : > { %p825_p13 = pneg %p824_p11 }
 0x346   : > { %p831_p10 = por %p830_p6, %p829_p5 }
 0x348   : > { %p832_p12 = pnand %p831_p10, %p825_p13 }
 0x34a   : > { %835 = shalt.err (!%p832_p12)
}
 0x34b   : > { %717 = dma.vmem_to_hbm [thread:$0]  (%p1155_p9), %s1065_s10, 128, %s1063_s16, %s470_s18  }
 0x34c   : > { %s712_s19 = spop %711  ;;  %s1096_s29 = scalar_lea.hbm %s1144_s6, %s629_s30 }
 0x34d   : > { %v467_v27 = vstv %s712_s19  ;;  %s475_s11 = scalar_lea.sflag [#allocation8], %s1051_s27  ;;  %s836_s14 = scalar_lea.vmem %s1067_s13, 128 }
 0x34e   : > { %468 = vst [vmem:[%s1055_s12] sm:$0xff] %v467_v27  ;;  %p837_p2 = scmp.ne.s32.totalorder %s1067_s13, %s836_s14  ;;  %s916_s15 = smov [#allocation7]  }
 0x34f   : > { %s840_s17 = sshll.u32 %s916_s15, 4  ;;  %s841_s17 = int_to_ptr.vmem [resolvable:$false] %s840_s17 }
 0x350   : > { %p838_p3 = pnand %p837_p2, %p1155_p9  ;;  %s842_s20 = scalar_lea.vmem %s841_s17, 256 }
 0x351   : > { %p843_p7 = scmp.lt.s32.totalorder %s1067_s13, %s841_s17  ;;  %p844_p8 = scmp.lt.s32.totalorder %s842_s20, %s836_s14 }
 0x352   : > { %p839_p4 = pneg %p838_p3 }
 0x353   : > { %p845_p11 = por %p844_p8, %p843_p7 }
 0x355   : > { %p846_p13 = pnand %p845_p11, %p839_p4 }
 0x357   : > { %849 = shalt.err (!%p846_p13)
}
 0x358   : > { %s850_s0 = scalar_lea.hbm %s1096_s29, 128  ;;  %s854_s10 = scalar_lea.hbm %s1144_s6, 384 }
 0x359   : > { %p851_p1 = scmp.ne.s32.totalorder %s1096_s29, %s850_s0  ;;  %p855_p6 = scmp.lt.u32.totalorder %s1096_s29, %s1144_s6 }
 0x35a   : > { %p856_p10 = scmp.lt.u32.totalorder %s854_s10, %s850_s0  ;;  %p858_p2 = scmp.lt.u32.totalorder %s850_s0, %s1096_s29 }
 0x35b   : > { %p852_p0 = pnand %p851_p1, %p1155_p9 }
 0x35c   : > { %p857_p12 = por %p856_p10, %p855_p6 }
 0x35d   : > { %p853_p5 = pneg %p852_p0 }
 0x35e   : > { %p859_p3 = por %p858_p2, %p857_p12 }
 0x360   : > { %p860_p4 = pnand %p859_p3, %p853_p5 }
 0x362   : > { %863 = shalt.err (!%p860_p4)
}
 0x363   : > { %718 = dma.vmem_to_hbm [thread:$0]  (%p1155_p9), %s1067_s13, 128, %s1096_s29, %s475_s11  }
 0x364 PF: > { %p734_p7 = scmp.ge.s32.totalorder %s906_s26, 2  ;;  %s513_s18 = sand.u32 1, %s894_s23  }
 0x365   : > { %p1156_p8 = scmp.ne.s32.totalorder %s1149_s9, 0  ;;  %s514_s19 = scalar_lea.sflag [#allocation5], %s513_s18 }
 0x367   : > { %p726_p11 = pnand %p734_p7, %p1156_p8 }
 0x369   : > { %885 = dma.done.wait (!%p726_p11), %s514_s19, 128  }
 0x36a   : > { %887 = vsyncadd (!%p726_p11), %s514_s19, 4294967168  ;;  %s523_s21 = scalar_lea.sflag [#allocation8], %s513_s18 }
 0x36b   : > { %889 = dma.done.wait (!%p726_p11), %s523_s21, 128  }
 0x36c   : > { %891 = vsyncadd (!%p726_p11), %s523_s21, 4294967168  ;;  %p22_p9 = scmp.ge.s32.totalorder %s980_s28, 5   ;;  %s1157_s23 = smov %s898_s24 }
 0x36d   : > { %s1158_s24 = smov %s902_s25  ;;  %s1159_s25 = smov %s991_s7 }
 0x36e   : > { %s1160_s26 = smov %s980_s28  ;;  %24 = sbr.rel (!%p22_p9) target bundleno = 8 (0x8), region = 100 }
 0x375   :  { %528 = vsyncpa [#allocation4], 1 }
 0x376   :  { %530 = vsyncpa [#allocation4 + $0x1], 1 }
 0x377   :  { %531 = vsyncpa [#allocation5], 1 }
 0x378   :  { %533 = vsyncpa [#allocation5 + $0x1], 1 }
 0x379   :  { %534 = vsyncpa [#allocation8], 1 }
 0x37a   :  { %536 = vsyncpa [#allocation8 + $0x1], 1 }

</bundles_post_ra>
